<compile_context>
chip_gen: v5e
topology: v5e:2x2
jax: 0.10.0
libtpu: 0.0.40
codegen_flags: <defaults>
</compile_context>

<pallas_src>
import functools

import jax
import jax.numpy as jnp
from jax import lax
from jax.experimental import pallas as pl
from jax.experimental.pallas import tpu as pltpu

_HEAD_LANES = 128  # lane-dense output tile; col 0 = exp(lambda logit), col 1 = softplus(K logit)


def _round_up(x, m):
    return ((x + m - 1) // m) * m


def _gate_stride(H):
    # Fully compact (all four gates inside one 128-lane vreg) when possible,
    # otherwise 128-aligned per-gate lane blocks.
    return H if 4 * H <= 128 else _round_up(H, 128)


# -----------------------------------------------------------------------------
# Pallas kernel: fused-gate LSTM recurrence + both heads in one kernel.
# -----------------------------------------------------------------------------
def _recurrent_model_kernel(
    x_ref,       # (T, Bp, 1)   raw input, time-major, zero-padded batch rows
    whh_ref,     # (H, 4*G)     recurrent weights pre-transposed (h @ Whh); i/f/o cols pre-scaled by 0.5
    wih_ref,     # (1, 4*G)     input weights (input_size = 1), same per-gate scaling
    b_ref,       # (1, 4*G)     b_ih + b_hh, same per-gate scaling
    whead_ref,   # (H, 128)     col 0 = w_lambda, col 1 = w_K, rest 0
    bhead_ref,   # (1, 128)     [b_lambda, b_K, 0, ...]
    hc0_ref,     # (2, Bp, H)   stacked [h0; c0]
    out_ref,     # (Bp, 128)    col 0 = lambda, col 1 = K
    *, H: int, G: int,
):
    T = x_ref.shape[0]
    Bp = x_ref.shape[1]
    L = 4 * G

    # Hoisted per-lane constant: lanes of the candidate ("g") gate keep tanh,
    # every other gate lane gets 0.5*tanh + 0.5 (== sigmoid of the unscaled logit,
    # the 1/2 having been folded into the i/f/o weight columns at pack time).
    zlane = lax.broadcasted_iota(jnp.int32, (Bp, L), 1)
    is_g_gate = (zlane >= 2 * G) & (zlane < 3 * G)

    def step(t, carry):
        h, c = carry
        # One fused MXU matmul + a rank-1 VALU broadcast for the input projection.
        # TODO(synk): hold Whh stationary across the time loop via
        # pltpu.matmul_push_rhs / matmul_acc_lhs / matmul_pop to stop re-streaming
        # the loop-invariant RHS every step (largest remaining MXU cost at M = Bp = 8).
        z = (jnp.dot(h, whh_ref[...], preferred_element_type=jnp.float32)
             + x_ref[t] * wih_ref[...] + b_ref[...])              # (Bp, 4G)
        tz = jnp.tanh(z)                                          # single EUP pass over all gates
        gates = jnp.where(is_g_gate, tz, 0.5 * tz + 0.5)
        i_g = gates[:, 0 * G:0 * G + H]
        f_g = gates[:, 1 * G:1 * G + H]
        g_g = gates[:, 2 * G:2 * G + H]
        o_g = gates[:, 3 * G:3 * G + H]
        c_new = f_g * c + i_g * g_g
        h_new = o_g * jnp.tanh(c_new)                             # second (and last) EUP pass
        return (h_new, c_new)

    # h/c live in vregs for the whole recurrence; unroll capped (serial chain gains
    # no ILP from full unroll, and bounded program size avoids vreg spills at large T).
    h_last, _ = lax.fori_loop(0, T, step, (hc0_ref[0], hc0_ref[1]),
                              unroll=min(max(T, 1), 8))

    heads = (jnp.dot(h_last, whead_ref[...], preferred_element_type=jnp.float32)
             + bhead_ref[...])                                    # (Bp, 128) lane-dense
    olane = lax.broadcasted_iota(jnp.int32, heads.shape, 1)
    # lane 0 -> exp (lambda head); lane 1 -> softplus (K head); padded lanes discarded.
    # whead/bhead padded lanes are exactly 0, so every discarded lane stays finite.
    out_ref[...] = jnp.where(olane == 0, jnp.exp(heads), jax.nn.softplus(heads))


# -----------------------------------------------------------------------------
# Wrapper
# -----------------------------------------------------------------------------
@jax.jit
def recurrent_model_forward(x, packed, hidden):
    """x: (B, T) float32; hidden = (h0, c0) each (1, B, H). Returns (lambda, K) each (B, 1)."""
    whh_p, wih_p, b_p, whead_p, bhead_p = packed
    h0 = hidden[0][0]            # (B, H)
    c0 = hidden[1][0]            # (B, H)
    B, T = x.shape
    H = whh_p.shape[0]
    G = whh_p.shape[1] // 4
    Bp = _round_up(B, 8)

    # Raw input only (the gate projection happens inside the kernel), time-major so the
    # kernel indexes the leading axis per step. Padded batch rows are zero and sliced off.
    x_tm = jnp.zeros((T, Bp, 1), jnp.float32).at[:, :B, 0].set(
        jnp.transpose(x, (1, 0)).astype(jnp.float32))

    # Stacked initial state (one small DMA); padded batch rows stay zero.
    hc0 = jnp.zeros((2, Bp, H), jnp.float32)
    hc0 = hc0.at[0, :B, :].set(h0.astype(jnp.float32))
    hc0 = hc0.at[1, :B, :].set(c0.astype(jnp.float32))

    kernel = functools.partial(_recurrent_model_kernel, H=H, G=G)
    vmem = pl.BlockSpec(memory_space=pltpu.MemorySpace.VMEM)
    out = pl.pallas_call(
        kernel,
        out_shape=jax.ShapeDtypeStruct((Bp, _HEAD_LANES), jnp.float32),
        in_specs=[vmem] * 7,
        out_specs=vmem,
    )(x_tm, whh_p, wih_p, b_p, whead_p, bhead_p, hc0)
    # TODO(synk): for very large H (v7x 64 MiB VMEM), stream (K,N) tiles of whh via
    # pltpu.emit_pipeline / store it bf16, and for large batches add a leading
    # "parallel" grid axis over batch tiles so v7x's second TensorCore is used.

    return out[:B, 0:1], out[:B, 1:2]


# -----------------------------------------------------------------------------
# Parameters: raw PyTorch layout + packing into fused, lane-aligned kernel layout
# -----------------------------------------------------------------------------
def init_params(key, hidden_size, input_size=1):
    """Raw parameters in PyTorch nn.LSTM / nn.Linear layout (gate order i, f, g, o)."""
    H = hidden_size
    k = 1.0 / jnp.sqrt(jnp.float32(H))
    ks = jax.random.split(key, 8)
    return dict(
        weight_ih=jax.random.uniform(ks[0], (4 * H, input_size), jnp.float32, -k, k),
        weight_hh=jax.random.uniform(ks[1], (4 * H, H), jnp.float32, -k, k),
        bias_ih=jax.random.uniform(ks[2], (4 * H,), jnp.float32, -k, k),
        bias_hh=jax.random.uniform(ks[3], (4 * H,), jnp.float32, -k, k),
        w_lambda=jax.random.uniform(ks[4], (1, H), jnp.float32, -k, k),
        b_lambda=jax.random.uniform(ks[5], (1,), jnp.float32, -k, k),
        w_K=jax.random.uniform(ks[6], (1, H), jnp.float32, -k, k),
        b_K=jax.random.uniform(ks[7], (1,), jnp.float32, -k, k),
    )


def pack_params(raw):
    """Pack into fused kernel layout.

    Gate g occupies lanes [g*G, g*G + H); G = H when 4*H <= 128 (compact single-vreg
    layout), else a 128-multiple. i/f/o columns are pre-scaled by 0.5 so the kernel's
    single tanh implements sigmoid(y) = 0.5*tanh(y/2) + 0.5 for those gates.
    """
    W_ih, W_hh = raw["weight_ih"], raw["weight_hh"]
    bias = raw["bias_ih"] + raw["bias_hh"]
    H = W_hh.shape[1]
    G = _gate_stride(H)
    L = 4 * G

    whh_p = jnp.zeros((H, L), jnp.float32)
    wih_p = jnp.zeros((1, L), jnp.float32)
    b_p = jnp.zeros((1, L), jnp.float32)
    for g, scale in enumerate((0.5, 0.5, 1.0, 0.5)):      # gate order (i, f, g, o)
        whh_p = whh_p.at[:, g * G:g * G + H].set(scale * W_hh[g * H:(g + 1) * H, :].T)
        wih_p = wih_p.at[0, g * G:g * G + H].set(scale * W_ih[g * H:(g + 1) * H, 0])
        b_p = b_p.at[0, g * G:g * G + H].set(scale * bias[g * H:(g + 1) * H])

    whead_p = jnp.zeros((H, _HEAD_LANES), jnp.float32)
    whead_p = whead_p.at[:, 0].set(raw["w_lambda"][0])
    whead_p = whead_p.at[:, 1].set(raw["w_K"][0])
    bhead_p = jnp.zeros((1, _HEAD_LANES), jnp.float32)
    bhead_p = bhead_p.at[0, 0].set(raw["b_lambda"][0])
    bhead_p = bhead_p.at[0, 1].set(raw["b_K"][0])
    return (whh_p, wih_p, b_p, whead_p, bhead_p)


def init_hidden(batch_size, hidden_size):
    return (jnp.zeros((1, batch_size, hidden_size), jnp.float32),
            jnp.zeros((1, batch_size, hidden_size), jnp.float32))


# -----------------------------------------------------------------------------
# Pure-JAX reference (PyTorch nn.LSTM semantics) for correctness check
# -----------------------------------------------------------------------------
def reference_forward(x, raw, hidden):
    W_ih, W_hh = raw["weight_ih"], raw["weight_hh"]
    bias = raw["bias_ih"] + raw["bias_hh"]
    H = W_hh.shape[1]
    h, c = hidden[0][0], hidden[1][0]

    def step(carry, x_t):
        h, c = carry
        gates = x_t[:, None] @ W_ih.T + h @ W_hh.T + bias[None, :]
        i_g = jax.nn.sigmoid(gates[:, 0 * H:1 * H])
        f_g = jax.nn.sigmoid(gates[:, 1 * H:2 * H])
        g_g = jnp.tanh(gates[:, 2 * H:3 * H])
        o_g = jax.nn.sigmoid(gates[:, 3 * H:4 * H])
        c = f_g * c + i_g * g_g
        h = o_g * jnp.tanh(c)
        return (h, c), None

    (h, _), _ = lax.scan(step, (h, c), jnp.transpose(x, (1, 0)))
    lam = jnp.exp(h @ raw["w_lambda"].T + raw["b_lambda"])
    k = jax.nn.softplus(h @ raw["w_K"].T + raw["b_K"])
    return lam, k


if __name__ == "__main__":
    B, T, H = 4, 8, 32          # batch, sequence length, hidden size
    key = jax.random.PRNGKey(0)
    k_x, k_p = jax.random.split(key)

    x = jax.random.normal(k_x, (B, T), jnp.float32)   # model input before unsqueeze
    raw = init_params(k_p, H)
    packed = pack_params(raw)
    hidden = init_hidden(B, H)

    lam_out, k_out = recurrent_model_forward(x, packed, hidden)
    jax.block_until_ready((lam_out, k_out))

    lam_ref, k_ref = reference_forward(x, raw, hidden)
    assert lam_out.shape == (B, 1) and k_out.shape == (B, 1)
    assert jnp.allclose(lam_out, lam_ref, atol=1e-4, rtol=1e-4)
    assert jnp.allclose(k_out, k_ref, atol=1e-4, rtol=1e-4)

    print("KERNEL_OK")
</pallas_src>

<mosaic_0001>
module attributes {stable_mosaic.version = 11 : i64} {
  func.func @_recurrent_model_kernel(%arg0: memref<8x8x1xf32, #tpu.memory_space<vmem>>, %arg1: memref<32x128xf32, #tpu.memory_space<vmem>>, %arg2: memref<1x128xf32, #tpu.memory_space<vmem>>, %arg3: memref<1x128xf32, #tpu.memory_space<vmem>>, %arg4: memref<32x128xf32, #tpu.memory_space<vmem>>, %arg5: memref<1x128xf32, #tpu.memory_space<vmem>>, %arg6: memref<2x8x32xf32, #tpu.memory_space<vmem>>, %arg7: memref<8x128xf32, #tpu.memory_space<vmem>>) attributes {dimension_semantics = [], scalar_prefetch = 0 : i64, scratch_operands = 0 : i64, tpu.core_type = #tpu.core_type<tc>} {
    %0 = tpu.iota {dimensions = array<i32: 1>} : vector<8x128xi32>
    %c64_i32 = arith.constant 64 : i32
    %1 = vector.broadcast %c64_i32 : i32 to vector<8x128xi32>
    %2 = arith.cmpi sge, %0, %1 : vector<8x128xi32>
    %c96_i32 = arith.constant 96 : i32
    %3 = vector.broadcast %c96_i32 : i32 to vector<8x128xi32>
    %4 = arith.cmpi slt, %0, %3 : vector<8x128xi32>
    %5 = arith.andi %2, %4 : vector<8x128xi1>
    %c0 = arith.constant 0 : index
    %c0_0 = arith.constant 0 : index
    %c0_1 = arith.constant 0 : index
    %6 = vector.load %arg6[%c0, %c0_0, %c0_1] : memref<2x8x32xf32, #tpu.memory_space<vmem>>, vector<1x8x32xf32>
    %7 = vector.shape_cast %6 : vector<1x8x32xf32> to vector<8x32xf32>
    %c1 = arith.constant 1 : index
    %c0_2 = arith.constant 0 : index
    %c0_3 = arith.constant 0 : index
    %8 = vector.load %arg6[%c1, %c0_2, %c0_3] : memref<2x8x32xf32, #tpu.memory_space<vmem>>, vector<1x8x32xf32>
    %9 = vector.shape_cast %8 : vector<1x8x32xf32> to vector<8x32xf32>
    %c0_i32 = arith.constant 0 : i32
    %c0_4 = arith.constant 0 : index
    %c0_5 = arith.constant 0 : index
    %10 = vector.load %arg1[%c0_4, %c0_5] : memref<32x128xf32, #tpu.memory_space<vmem>>, vector<32x128xf32>
    %cst = arith.constant dense<0.000000e+00> : vector<8x128xf32>
    %11 = tpu.matmul %7, %10, %cst {dimension_numbers = #tpu.dot_dimension_numbers<[1], [0], [0], [1], [0, 0, 1, 1], [], []>} : vector<8x32xf32>, vector<32x128xf32>, vector<8x128xf32> -> vector<8x128xf32>
    %12 = arith.index_cast %c0_i32 : i32 to index
    %c0_6 = arith.constant 0 : index
    %c0_7 = arith.constant 0 : index
    %13 = vector.load %arg0[%12, %c0_6, %c0_7] : memref<8x8x1xf32, #tpu.memory_space<vmem>>, vector<1x8x1xf32>
    %14 = vector.shape_cast %13 : vector<1x8x1xf32> to vector<8x1xf32>
    %c0_8 = arith.constant 0 : index
    %c0_9 = arith.constant 0 : index
    %15 = vector.load %arg2[%c0_8, %c0_9] : memref<1x128xf32, #tpu.memory_space<vmem>>, vector<1x128xf32>
    %16 = vector.broadcast %14 : vector<8x1xf32> to vector<8x128xf32>
    %17 = vector.broadcast %15 : vector<1x128xf32> to vector<8x128xf32>
    %18 = arith.mulf %16, %17 : vector<8x128xf32>
    %19 = arith.addf %11, %18 : vector<8x128xf32>
    %c0_10 = arith.constant 0 : index
    %c0_11 = arith.constant 0 : index
    %20 = vector.load %arg3[%c0_10, %c0_11] : memref<1x128xf32, #tpu.memory_space<vmem>>, vector<1x128xf32>
    %21 = vector.broadcast %20 : vector<1x128xf32> to vector<8x128xf32>
    %22 = arith.addf %19, %21 : vector<8x128xf32>
    %23 = math.tanh %22 : vector<8x128xf32>
    %cst_12 = arith.constant 5.000000e-01 : f32
    %24 = vector.broadcast %cst_12 : f32 to vector<8x128xf32>
    %25 = arith.mulf %24, %23 : vector<8x128xf32>
    %cst_13 = arith.constant 5.000000e-01 : f32
    %26 = vector.broadcast %cst_13 : f32 to vector<8x128xf32>
    %27 = arith.addf %25, %26 : vector<8x128xf32>
    %28 = arith.select %5, %23, %27 : vector<8x128xi1>, vector<8x128xf32>
    %29 = vector.extract_strided_slice %28 {offsets = [0, 0], sizes = [8, 32], strides = [1, 1]} : vector<8x128xf32> to vector<8x32xf32>
    %30 = vector.extract_strided_slice %28 {offsets = [0, 32], sizes = [8, 32], strides = [1, 1]} : vector<8x128xf32> to vector<8x32xf32>
    %31 = vector.extract_strided_slice %28 {offsets = [0, 64], sizes = [8, 32], strides = [1, 1]} : vector<8x128xf32> to vector<8x32xf32>
    %32 = vector.extract_strided_slice %28 {offsets = [0, 96], sizes = [8, 32], strides = [1, 1]} : vector<8x128xf32> to vector<8x32xf32>
    %33 = arith.mulf %30, %9 : vector<8x32xf32>
    %34 = arith.mulf %29, %31 : vector<8x32xf32>
    %35 = arith.addf %33, %34 : vector<8x32xf32>
    %36 = math.tanh %35 : vector<8x32xf32>
    %37 = arith.mulf %32, %36 : vector<8x32xf32>
    %c1_i32 = arith.constant 1 : i32
    %c0_14 = arith.constant 0 : index
    %c0_15 = arith.constant 0 : index
    %38 = vector.load %arg1[%c0_14, %c0_15] : memref<32x128xf32, #tpu.memory_space<vmem>>, vector<32x128xf32>
    %cst_16 = arith.constant dense<0.000000e+00> : vector<8x128xf32>
    %39 = tpu.matmul %37, %38, %cst_16 {dimension_numbers = #tpu.dot_dimension_numbers<[1], [0], [0], [1], [0, 0, 1, 1], [], []>} : vector<8x32xf32>, vector<32x128xf32>, vector<8x128xf32> -> vector<8x128xf32>
    %40 = arith.index_cast %c1_i32 : i32 to index
    %c0_17 = arith.constant 0 : index
    %c0_18 = arith.constant 0 : index
    %41 = vector.load %arg0[%40, %c0_17, %c0_18] : memref<8x8x1xf32, #tpu.memory_space<vmem>>, vector<1x8x1xf32>
    %42 = vector.shape_cast %41 : vector<1x8x1xf32> to vector<8x1xf32>
    %c0_19 = arith.constant 0 : index
    %c0_20 = arith.constant 0 : index
    %43 = vector.load %arg2[%c0_19, %c0_20] : memref<1x128xf32, #tpu.memory_space<vmem>>, vector<1x128xf32>
    %44 = vector.broadcast %42 : vector<8x1xf32> to vector<8x128xf32>
    %45 = vector.broadcast %43 : vector<1x128xf32> to vector<8x128xf32>
    %46 = arith.mulf %44, %45 : vector<8x128xf32>
    %47 = arith.addf %39, %46 : vector<8x128xf32>
    %c0_21 = arith.constant 0 : index
    %c0_22 = arith.constant 0 : index
    %48 = vector.load %arg3[%c0_21, %c0_22] : memref<1x128xf32, #tpu.memory_space<vmem>>, vector<1x128xf32>
    %49 = vector.broadcast %48 : vector<1x128xf32> to vector<8x128xf32>
    %50 = arith.addf %47, %49 : vector<8x128xf32>
    %51 = math.tanh %50 : vector<8x128xf32>
    %cst_23 = arith.constant 5.000000e-01 : f32
    %52 = vector.broadcast %cst_23 : f32 to vector<8x128xf32>
    %53 = arith.mulf %52, %51 : vector<8x128xf32>
    %cst_24 = arith.constant 5.000000e-01 : f32
    %54 = vector.broadcast %cst_24 : f32 to vector<8x128xf32>
    %55 = arith.addf %53, %54 : vector<8x128xf32>
    %56 = arith.select %5, %51, %55 : vector<8x128xi1>, vector<8x128xf32>
    %57 = vector.extract_strided_slice %56 {offsets = [0, 0], sizes = [8, 32], strides = [1, 1]} : vector<8x128xf32> to vector<8x32xf32>
    %58 = vector.extract_strided_slice %56 {offsets = [0, 32], sizes = [8, 32], strides = [1, 1]} : vector<8x128xf32> to vector<8x32xf32>
    %59 = vector.extract_strided_slice %56 {offsets = [0, 64], sizes = [8, 32], strides = [1, 1]} : vector<8x128xf32> to vector<8x32xf32>
    %60 = vector.extract_strided_slice %56 {offsets = [0, 96], sizes = [8, 32], strides = [1, 1]} : vector<8x128xf32> to vector<8x32xf32>
    %61 = arith.mulf %58, %35 : vector<8x32xf32>
    %62 = arith.mulf %57, %59 : vector<8x32xf32>
    %63 = arith.addf %61, %62 : vector<8x32xf32>
    %64 = math.tanh %63 : vector<8x32xf32>
    %65 = arith.mulf %60, %64 : vector<8x32xf32>
    %c2_i32 = arith.constant 2 : i32
    %c0_25 = arith.constant 0 : index
    %c0_26 = arith.constant 0 : index
    %66 = vector.load %arg1[%c0_25, %c0_26] : memref<32x128xf32, #tpu.memory_space<vmem>>, vector<32x128xf32>
    %cst_27 = arith.constant dense<0.000000e+00> : vector<8x128xf32>
    %67 = tpu.matmul %65, %66, %cst_27 {dimension_numbers = #tpu.dot_dimension_numbers<[1], [0], [0], [1], [0, 0, 1, 1], [], []>} : vector<8x32xf32>, vector<32x128xf32>, vector<8x128xf32> -> vector<8x128xf32>
    %68 = arith.index_cast %c2_i32 : i32 to index
    %c0_28 = arith.constant 0 : index
    %c0_29 = arith.constant 0 : index
    %69 = vector.load %arg0[%68, %c0_28, %c0_29] : memref<8x8x1xf32, #tpu.memory_space<vmem>>, vector<1x8x1xf32>
    %70 = vector.shape_cast %69 : vector<1x8x1xf32> to vector<8x1xf32>
    %c0_30 = arith.constant 0 : index
    %c0_31 = arith.constant 0 : index
    %71 = vector.load %arg2[%c0_30, %c0_31] : memref<1x128xf32, #tpu.memory_space<vmem>>, vector<1x128xf32>
    %72 = vector.broadcast %70 : vector<8x1xf32> to vector<8x128xf32>
    %73 = vector.broadcast %71 : vector<1x128xf32> to vector<8x128xf32>
    %74 = arith.mulf %72, %73 : vector<8x128xf32>
    %75 = arith.addf %67, %74 : vector<8x128xf32>
    %c0_32 = arith.constant 0 : index
    %c0_33 = arith.constant 0 : index
    %76 = vector.load %arg3[%c0_32, %c0_33] : memref<1x128xf32, #tpu.memory_space<vmem>>, vector<1x128xf32>
    %77 = vector.broadcast %76 : vector<1x128xf32> to vector<8x128xf32>
    %78 = arith.addf %75, %77 : vector<8x128xf32>
    %79 = math.tanh %78 : vector<8x128xf32>
    %cst_34 = arith.constant 5.000000e-01 : f32
    %80 = vector.broadcast %cst_34 : f32 to vector<8x128xf32>
    %81 = arith.mulf %80, %79 : vector<8x128xf32>
    %cst_35 = arith.constant 5.000000e-01 : f32
    %82 = vector.broadcast %cst_35 : f32 to vector<8x128xf32>
    %83 = arith.addf %81, %82 : vector<8x128xf32>
    %84 = arith.select %5, %79, %83 : vector<8x128xi1>, vector<8x128xf32>
    %85 = vector.extract_strided_slice %84 {offsets = [0, 0], sizes = [8, 32], strides = [1, 1]} : vector<8x128xf32> to vector<8x32xf32>
    %86 = vector.extract_strided_slice %84 {offsets = [0, 32], sizes = [8, 32], strides = [1, 1]} : vector<8x128xf32> to vector<8x32xf32>
    %87 = vector.extract_strided_slice %84 {offsets = [0, 64], sizes = [8, 32], strides = [1, 1]} : vector<8x128xf32> to vector<8x32xf32>
    %88 = vector.extract_strided_slice %84 {offsets = [0, 96], sizes = [8, 32], strides = [1, 1]} : vector<8x128xf32> to vector<8x32xf32>
    %89 = arith.mulf %86, %63 : vector<8x32xf32>
    %90 = arith.mulf %85, %87 : vector<8x32xf32>
    %91 = arith.addf %89, %90 : vector<8x32xf32>
    %92 = math.tanh %91 : vector<8x32xf32>
    %93 = arith.mulf %88, %92 : vector<8x32xf32>
    %c3_i32 = arith.constant 3 : i32
    %c0_36 = arith.constant 0 : index
    %c0_37 = arith.constant 0 : index
    %94 = vector.load %arg1[%c0_36, %c0_37] : memref<32x128xf32, #tpu.memory_space<vmem>>, vector<32x128xf32>
    %cst_38 = arith.constant dense<0.000000e+00> : vector<8x128xf32>
    %95 = tpu.matmul %93, %94, %cst_38 {dimension_numbers = #tpu.dot_dimension_numbers<[1], [0], [0], [1], [0, 0, 1, 1], [], []>} : vector<8x32xf32>, vector<32x128xf32>, vector<8x128xf32> -> vector<8x128xf32>
    %96 = arith.index_cast %c3_i32 : i32 to index
    %c0_39 = arith.constant 0 : index
    %c0_40 = arith.constant 0 : index
    %97 = vector.load %arg0[%96, %c0_39, %c0_40] : memref<8x8x1xf32, #tpu.memory_space<vmem>>, vector<1x8x1xf32>
    %98 = vector.shape_cast %97 : vector<1x8x1xf32> to vector<8x1xf32>
    %c0_41 = arith.constant 0 : index
    %c0_42 = arith.constant 0 : index
    %99 = vector.load %arg2[%c0_41, %c0_42] : memref<1x128xf32, #tpu.memory_space<vmem>>, vector<1x128xf32>
    %100 = vector.broadcast %98 : vector<8x1xf32> to vector<8x128xf32>
    %101 = vector.broadcast %99 : vector<1x128xf32> to vector<8x128xf32>
    %102 = arith.mulf %100, %101 : vector<8x128xf32>
    %103 = arith.addf %95, %102 : vector<8x128xf32>
    %c0_43 = arith.constant 0 : index
    %c0_44 = arith.constant 0 : index
    %104 = vector.load %arg3[%c0_43, %c0_44] : memref<1x128xf32, #tpu.memory_space<vmem>>, vector<1x128xf32>
    %105 = vector.broadcast %104 : vector<1x128xf32> to vector<8x128xf32>
    %106 = arith.addf %103, %105 : vector<8x128xf32>
    %107 = math.tanh %106 : vector<8x128xf32>
    %cst_45 = arith.constant 5.000000e-01 : f32
    %108 = vector.broadcast %cst_45 : f32 to vector<8x128xf32>
    %109 = arith.mulf %108, %107 : vector<8x128xf32>
    %cst_46 = arith.constant 5.000000e-01 : f32
    %110 = vector.broadcast %cst_46 : f32 to vector<8x128xf32>
    %111 = arith.addf %109, %110 : vector<8x128xf32>
    %112 = arith.select %5, %107, %111 : vector<8x128xi1>, vector<8x128xf32>
    %113 = vector.extract_strided_slice %112 {offsets = [0, 0], sizes = [8, 32], strides = [1, 1]} : vector<8x128xf32> to vector<8x32xf32>
    %114 = vector.extract_strided_slice %112 {offsets = [0, 32], sizes = [8, 32], strides = [1, 1]} : vector<8x128xf32> to vector<8x32xf32>
    %115 = vector.extract_strided_slice %112 {offsets = [0, 64], sizes = [8, 32], strides = [1, 1]} : vector<8x128xf32> to vector<8x32xf32>
    %116 = vector.extract_strided_slice %112 {offsets = [0, 96], sizes = [8, 32], strides = [1, 1]} : vector<8x128xf32> to vector<8x32xf32>
    %117 = arith.mulf %114, %91 : vector<8x32xf32>
    %118 = arith.mulf %113, %115 : vector<8x32xf32>
    %119 = arith.addf %117, %118 : vector<8x32xf32>
    %120 = math.tanh %119 : vector<8x32xf32>
    %121 = arith.mulf %116, %120 : vector<8x32xf32>
    %c4_i32 = arith.constant 4 : i32
    %c0_47 = arith.constant 0 : index
    %c0_48 = arith.constant 0 : index
    %122 = vector.load %arg1[%c0_47, %c0_48] : memref<32x128xf32, #tpu.memory_space<vmem>>, vector<32x128xf32>
    %cst_49 = arith.constant dense<0.000000e+00> : vector<8x128xf32>
    %123 = tpu.matmul %121, %122, %cst_49 {dimension_numbers = #tpu.dot_dimension_numbers<[1], [0], [0], [1], [0, 0, 1, 1], [], []>} : vector<8x32xf32>, vector<32x128xf32>, vector<8x128xf32> -> vector<8x128xf32>
    %124 = arith.index_cast %c4_i32 : i32 to index
    %c0_50 = arith.constant 0 : index
    %c0_51 = arith.constant 0 : index
    %125 = vector.load %arg0[%124, %c0_50, %c0_51] : memref<8x8x1xf32, #tpu.memory_space<vmem>>, vector<1x8x1xf32>
    %126 = vector.shape_cast %125 : vector<1x8x1xf32> to vector<8x1xf32>
    %c0_52 = arith.constant 0 : index
    %c0_53 = arith.constant 0 : index
    %127 = vector.load %arg2[%c0_52, %c0_53] : memref<1x128xf32, #tpu.memory_space<vmem>>, vector<1x128xf32>
    %128 = vector.broadcast %126 : vector<8x1xf32> to vector<8x128xf32>
    %129 = vector.broadcast %127 : vector<1x128xf32> to vector<8x128xf32>
    %130 = arith.mulf %128, %129 : vector<8x128xf32>
    %131 = arith.addf %123, %130 : vector<8x128xf32>
    %c0_54 = arith.constant 0 : index
    %c0_55 = arith.constant 0 : index
    %132 = vector.load %arg3[%c0_54, %c0_55] : memref<1x128xf32, #tpu.memory_space<vmem>>, vector<1x128xf32>
    %133 = vector.broadcast %132 : vector<1x128xf32> to vector<8x128xf32>
    %134 = arith.addf %131, %133 : vector<8x128xf32>
    %135 = math.tanh %134 : vector<8x128xf32>
    %cst_56 = arith.constant 5.000000e-01 : f32
    %136 = vector.broadcast %cst_56 : f32 to vector<8x128xf32>
    %137 = arith.mulf %136, %135 : vector<8x128xf32>
    %cst_57 = arith.constant 5.000000e-01 : f32
    %138 = vector.broadcast %cst_57 : f32 to vector<8x128xf32>
    %139 = arith.addf %137, %138 : vector<8x128xf32>
    %140 = arith.select %5, %135, %139 : vector<8x128xi1>, vector<8x128xf32>
    %141 = vector.extract_strided_slice %140 {offsets = [0, 0], sizes = [8, 32], strides = [1, 1]} : vector<8x128xf32> to vector<8x32xf32>
    %142 = vector.extract_strided_slice %140 {offsets = [0, 32], sizes = [8, 32], strides = [1, 1]} : vector<8x128xf32> to vector<8x32xf32>
    %143 = vector.extract_strided_slice %140 {offsets = [0, 64], sizes = [8, 32], strides = [1, 1]} : vector<8x128xf32> to vector<8x32xf32>
    %144 = vector.extract_strided_slice %140 {offsets = [0, 96], sizes = [8, 32], strides = [1, 1]} : vector<8x128xf32> to vector<8x32xf32>
    %145 = arith.mulf %142, %119 : vector<8x32xf32>
    %146 = arith.mulf %141, %143 : vector<8x32xf32>
    %147 = arith.addf %145, %146 : vector<8x32xf32>
    %148 = math.tanh %147 : vector<8x32xf32>
    %149 = arith.mulf %144, %148 : vector<8x32xf32>
    %c5_i32 = arith.constant 5 : i32
    %c0_58 = arith.constant 0 : index
    %c0_59 = arith.constant 0 : index
    %150 = vector.load %arg1[%c0_58, %c0_59] : memref<32x128xf32, #tpu.memory_space<vmem>>, vector<32x128xf32>
    %cst_60 = arith.constant dense<0.000000e+00> : vector<8x128xf32>
    %151 = tpu.matmul %149, %150, %cst_60 {dimension_numbers = #tpu.dot_dimension_numbers<[1], [0], [0], [1], [0, 0, 1, 1], [], []>} : vector<8x32xf32>, vector<32x128xf32>, vector<8x128xf32> -> vector<8x128xf32>
    %152 = arith.index_cast %c5_i32 : i32 to index
    %c0_61 = arith.constant 0 : index
    %c0_62 = arith.constant 0 : index
    %153 = vector.load %arg0[%152, %c0_61, %c0_62] : memref<8x8x1xf32, #tpu.memory_space<vmem>>, vector<1x8x1xf32>
    %154 = vector.shape_cast %153 : vector<1x8x1xf32> to vector<8x1xf32>
    %c0_63 = arith.constant 0 : index
    %c0_64 = arith.constant 0 : index
    %155 = vector.load %arg2[%c0_63, %c0_64] : memref<1x128xf32, #tpu.memory_space<vmem>>, vector<1x128xf32>
    %156 = vector.broadcast %154 : vector<8x1xf32> to vector<8x128xf32>
    %157 = vector.broadcast %155 : vector<1x128xf32> to vector<8x128xf32>
    %158 = arith.mulf %156, %157 : vector<8x128xf32>
    %159 = arith.addf %151, %158 : vector<8x128xf32>
    %c0_65 = arith.constant 0 : index
    %c0_66 = arith.constant 0 : index
    %160 = vector.load %arg3[%c0_65, %c0_66] : memref<1x128xf32, #tpu.memory_space<vmem>>, vector<1x128xf32>
    %161 = vector.broadcast %160 : vector<1x128xf32> to vector<8x128xf32>
    %162 = arith.addf %159, %161 : vector<8x128xf32>
    %163 = math.tanh %162 : vector<8x128xf32>
    %cst_67 = arith.constant 5.000000e-01 : f32
    %164 = vector.broadcast %cst_67 : f32 to vector<8x128xf32>
    %165 = arith.mulf %164, %163 : vector<8x128xf32>
    %cst_68 = arith.constant 5.000000e-01 : f32
    %166 = vector.broadcast %cst_68 : f32 to vector<8x128xf32>
    %167 = arith.addf %165, %166 : vector<8x128xf32>
    %168 = arith.select %5, %163, %167 : vector<8x128xi1>, vector<8x128xf32>
    %169 = vector.extract_strided_slice %168 {offsets = [0, 0], sizes = [8, 32], strides = [1, 1]} : vector<8x128xf32> to vector<8x32xf32>
    %170 = vector.extract_strided_slice %168 {offsets = [0, 32], sizes = [8, 32], strides = [1, 1]} : vector<8x128xf32> to vector<8x32xf32>
    %171 = vector.extract_strided_slice %168 {offsets = [0, 64], sizes = [8, 32], strides = [1, 1]} : vector<8x128xf32> to vector<8x32xf32>
    %172 = vector.extract_strided_slice %168 {offsets = [0, 96], sizes = [8, 32], strides = [1, 1]} : vector<8x128xf32> to vector<8x32xf32>
    %173 = arith.mulf %170, %147 : vector<8x32xf32>
    %174 = arith.mulf %169, %171 : vector<8x32xf32>
    %175 = arith.addf %173, %174 : vector<8x32xf32>
    %176 = math.tanh %175 : vector<8x32xf32>
    %177 = arith.mulf %172, %176 : vector<8x32xf32>
    %c6_i32 = arith.constant 6 : i32
    %c0_69 = arith.constant 0 : index
    %c0_70 = arith.constant 0 : index
    %178 = vector.load %arg1[%c0_69, %c0_70] : memref<32x128xf32, #tpu.memory_space<vmem>>, vector<32x128xf32>
    %cst_71 = arith.constant dense<0.000000e+00> : vector<8x128xf32>
    %179 = tpu.matmul %177, %178, %cst_71 {dimension_numbers = #tpu.dot_dimension_numbers<[1], [0], [0], [1], [0, 0, 1, 1], [], []>} : vector<8x32xf32>, vector<32x128xf32>, vector<8x128xf32> -> vector<8x128xf32>
    %180 = arith.index_cast %c6_i32 : i32 to index
    %c0_72 = arith.constant 0 : index
    %c0_73 = arith.constant 0 : index
    %181 = vector.load %arg0[%180, %c0_72, %c0_73] : memref<8x8x1xf32, #tpu.memory_space<vmem>>, vector<1x8x1xf32>
    %182 = vector.shape_cast %181 : vector<1x8x1xf32> to vector<8x1xf32>
    %c0_74 = arith.constant 0 : index
    %c0_75 = arith.constant 0 : index
    %183 = vector.load %arg2[%c0_74, %c0_75] : memref<1x128xf32, #tpu.memory_space<vmem>>, vector<1x128xf32>
    %184 = vector.broadcast %182 : vector<8x1xf32> to vector<8x128xf32>
    %185 = vector.broadcast %183 : vector<1x128xf32> to vector<8x128xf32>
    %186 = arith.mulf %184, %185 : vector<8x128xf32>
    %187 = arith.addf %179, %186 : vector<8x128xf32>
    %c0_76 = arith.constant 0 : index
    %c0_77 = arith.constant 0 : index
    %188 = vector.load %arg3[%c0_76, %c0_77] : memref<1x128xf32, #tpu.memory_space<vmem>>, vector<1x128xf32>
    %189 = vector.broadcast %188 : vector<1x128xf32> to vector<8x128xf32>
    %190 = arith.addf %187, %189 : vector<8x128xf32>
    %191 = math.tanh %190 : vector<8x128xf32>
    %cst_78 = arith.constant 5.000000e-01 : f32
    %192 = vector.broadcast %cst_78 : f32 to vector<8x128xf32>
    %193 = arith.mulf %192, %191 : vector<8x128xf32>
    %cst_79 = arith.constant 5.000000e-01 : f32
    %194 = vector.broadcast %cst_79 : f32 to vector<8x128xf32>
    %195 = arith.addf %193, %194 : vector<8x128xf32>
    %196 = arith.select %5, %191, %195 : vector<8x128xi1>, vector<8x128xf32>
    %197 = vector.extract_strided_slice %196 {offsets = [0, 0], sizes = [8, 32], strides = [1, 1]} : vector<8x128xf32> to vector<8x32xf32>
    %198 = vector.extract_strided_slice %196 {offsets = [0, 32], sizes = [8, 32], strides = [1, 1]} : vector<8x128xf32> to vector<8x32xf32>
    %199 = vector.extract_strided_slice %196 {offsets = [0, 64], sizes = [8, 32], strides = [1, 1]} : vector<8x128xf32> to vector<8x32xf32>
    %200 = vector.extract_strided_slice %196 {offsets = [0, 96], sizes = [8, 32], strides = [1, 1]} : vector<8x128xf32> to vector<8x32xf32>
    %201 = arith.mulf %198, %175 : vector<8x32xf32>
    %202 = arith.mulf %197, %199 : vector<8x32xf32>
    %203 = arith.addf %201, %202 : vector<8x32xf32>
    %204 = math.tanh %203 : vector<8x32xf32>
    %205 = arith.mulf %200, %204 : vector<8x32xf32>
    %c7_i32 = arith.constant 7 : i32
    %c0_80 = arith.constant 0 : index
    %c0_81 = arith.constant 0 : index
    %206 = vector.load %arg1[%c0_80, %c0_81] : memref<32x128xf32, #tpu.memory_space<vmem>>, vector<32x128xf32>
    %cst_82 = arith.constant dense<0.000000e+00> : vector<8x128xf32>
    %207 = tpu.matmul %205, %206, %cst_82 {dimension_numbers = #tpu.dot_dimension_numbers<[1], [0], [0], [1], [0, 0, 1, 1], [], []>} : vector<8x32xf32>, vector<32x128xf32>, vector<8x128xf32> -> vector<8x128xf32>
    %208 = arith.index_cast %c7_i32 : i32 to index
    %c0_83 = arith.constant 0 : index
    %c0_84 = arith.constant 0 : index
    %209 = vector.load %arg0[%208, %c0_83, %c0_84] : memref<8x8x1xf32, #tpu.memory_space<vmem>>, vector<1x8x1xf32>
    %210 = vector.shape_cast %209 : vector<1x8x1xf32> to vector<8x1xf32>
    %c0_85 = arith.constant 0 : index
    %c0_86 = arith.constant 0 : index
    %211 = vector.load %arg2[%c0_85, %c0_86] : memref<1x128xf32, #tpu.memory_space<vmem>>, vector<1x128xf32>
    %212 = vector.broadcast %210 : vector<8x1xf32> to vector<8x128xf32>
    %213 = vector.broadcast %211 : vector<1x128xf32> to vector<8x128xf32>
    %214 = arith.mulf %212, %213 : vector<8x128xf32>
    %215 = arith.addf %207, %214 : vector<8x128xf32>
    %c0_87 = arith.constant 0 : index
    %c0_88 = arith.constant 0 : index
    %216 = vector.load %arg3[%c0_87, %c0_88] : memref<1x128xf32, #tpu.memory_space<vmem>>, vector<1x128xf32>
    %217 = vector.broadcast %216 : vector<1x128xf32> to vector<8x128xf32>
    %218 = arith.addf %215, %217 : vector<8x128xf32>
    %219 = math.tanh %218 : vector<8x128xf32>
    %cst_89 = arith.constant 5.000000e-01 : f32
    %220 = vector.broadcast %cst_89 : f32 to vector<8x128xf32>
    %221 = arith.mulf %220, %219 : vector<8x128xf32>
    %cst_90 = arith.constant 5.000000e-01 : f32
    %222 = vector.broadcast %cst_90 : f32 to vector<8x128xf32>
    %223 = arith.addf %221, %222 : vector<8x128xf32>
    %224 = arith.select %5, %219, %223 : vector<8x128xi1>, vector<8x128xf32>
    %225 = vector.extract_strided_slice %224 {offsets = [0, 0], sizes = [8, 32], strides = [1, 1]} : vector<8x128xf32> to vector<8x32xf32>
    %226 = vector.extract_strided_slice %224 {offsets = [0, 32], sizes = [8, 32], strides = [1, 1]} : vector<8x128xf32> to vector<8x32xf32>
    %227 = vector.extract_strided_slice %224 {offsets = [0, 64], sizes = [8, 32], strides = [1, 1]} : vector<8x128xf32> to vector<8x32xf32>
    %228 = vector.extract_strided_slice %224 {offsets = [0, 96], sizes = [8, 32], strides = [1, 1]} : vector<8x128xf32> to vector<8x32xf32>
    %229 = arith.mulf %226, %203 : vector<8x32xf32>
    %230 = arith.mulf %225, %227 : vector<8x32xf32>
    %231 = arith.addf %229, %230 : vector<8x32xf32>
    %232 = math.tanh %231 : vector<8x32xf32>
    %233 = arith.mulf %228, %232 : vector<8x32xf32>
    %c8_i32 = arith.constant 8 : i32
    %c0_91 = arith.constant 0 : index
    %c0_92 = arith.constant 0 : index
    %234 = vector.load %arg4[%c0_91, %c0_92] : memref<32x128xf32, #tpu.memory_space<vmem>>, vector<32x128xf32>
    %cst_93 = arith.constant dense<0.000000e+00> : vector<8x128xf32>
    %235 = tpu.matmul %233, %234, %cst_93 {dimension_numbers = #tpu.dot_dimension_numbers<[1], [0], [0], [1], [0, 0, 1, 1], [], []>} : vector<8x32xf32>, vector<32x128xf32>, vector<8x128xf32> -> vector<8x128xf32>
    %c0_94 = arith.constant 0 : index
    %c0_95 = arith.constant 0 : index
    %236 = vector.load %arg5[%c0_94, %c0_95] : memref<1x128xf32, #tpu.memory_space<vmem>>, vector<1x128xf32>
    %237 = vector.broadcast %236 : vector<1x128xf32> to vector<8x128xf32>
    %238 = arith.addf %235, %237 : vector<8x128xf32>
    %239 = tpu.iota {dimensions = array<i32: 1>} : vector<8x128xi32>
    %c0_i32_96 = arith.constant 0 : i32
    %240 = vector.broadcast %c0_i32_96 : i32 to vector<8x128xi32>
    %241 = arith.cmpi eq, %239, %240 : vector<8x128xi32>
    %242 = math.exp %238 : vector<8x128xf32>
    %cst_97 = arith.constant 0.000000e+00 : f32
    %243 = vector.broadcast %cst_97 : f32 to vector<8x128xf32>
    %244 = arith.maximumf %238, %243 : vector<8x128xf32>
    %245 = vector.broadcast %cst_97 : f32 to vector<8x128xf32>
    %246 = arith.subf %238, %245 : vector<8x128xf32>
    %247 = arith.cmpf one, %246, %246 : vector<8x128xf32>
    %248 = vector.broadcast %cst_97 : f32 to vector<8x128xf32>
    %249 = arith.addf %238, %248 : vector<8x128xf32>
    %250 = math.absf %246 : vector<8x128xf32>
    %cst_98 = arith.constant 0.000000e+00 : f32
    %251 = vector.broadcast %cst_98 : f32 to vector<8x128xf32>
    %252 = arith.subf %251, %250 : vector<8x128xf32>
    %253 = math.exp %252 : vector<8x128xf32>
    %254 = math.log1p %253 : vector<8x128xf32>
    %255 = arith.addf %244, %254 : vector<8x128xf32>
    %256 = arith.select %247, %249, %255 : vector<8x128xi1>, vector<8x128xf32>
    %257 = arith.select %241, %242, %256 : vector<8x128xi1>, vector<8x128xf32>
    %c0_99 = arith.constant 0 : index
    %c0_100 = arith.constant 0 : index
    %258 = vector.load %arg7[%c0_99, %c0_100] : memref<8x128xf32, #tpu.memory_space<vmem>>, vector<8x128xf32>
    tpu.vector_store %arg7[%c0_99, %c0_100], %257 {strides = array<i32>} : memref<8x128xf32, #tpu.memory_space<vmem>>, vector<8x128xf32>,
    return
  }
}

</mosaic_0001>

<bundles_post_ra>
// kernel: recurrent_model_forward.1
= control target key start
LH: loop header
LB: loop body
LE: loop exit
PB: predicated region body
PF: predicated region fallthrough
CT: control target
= control target key end

     0   :  { %v612_v2 = vmov 0   ;;  %s613_s11 = smov 32   ;;  %vm49_vm0 = vcmask 261120   ;;  %v26_v14 = vlaneseq  ;;  %s808_s1 = inlined_call_operand.vmem [shape: f32[32,128], index: 1, kind: input, shape index: {}]   ;;  %s809_s0 = inlined_call_operand.vmem [shape: f32[8,8,1], index: 0, kind: input, shape index: {}]   ;;  %s810_s6 = inlined_call_operand.vmem [shape: f32[2,8,32], index: 6, kind: input, shape index: {}]   ;;  %s811_s2 = inlined_call_operand.vmem [shape: f32[1,128], index: 2, kind: input, shape index: {}]   ;;  %s812_s3 = inlined_call_operand.vmem [shape: f32[1,128], index: 3, kind: input, shape index: {}]   ;;  %s813_s4 = inlined_call_operand.vmem [shape: f32[32,128], index: 4, kind: input, shape index: {}]   ;;  %s814_s5 = inlined_call_operand.vmem [shape: f32[1,128], index: 5, kind: input, shape index: {}]   ;;  %s815_s7 = inlined_call_operand.vmem [shape: f32[8,128], index: 7, kind: output, shape index: {}]  }
   0x1   :  { %v37_v0 = vld [vmem:[%s808_s1 + $0x18] sm:$0xff]  ;;  %v36_v1 = vld [vmem:[%s808_s1 + $0x10] sm:$0xff]  ;;  %568 = vset.pattern.permute.xlu0 %v612_v2  ;;  %569 = vset.pattern.permute.xlu2 %v612_v2  ;;  %v38_v3 = vld [vmem:[%s809_s0] sm:$0xff] }
   0x2   :  { %65 = vmatpush.msra.mxu0 %v37_v0  ;;  %128 = vmatpush.msra.mxu1 %v37_v0  ;;  %v35_v4 = vld [vmem:[%s808_s1 + $0x8] sm:$0xff]  ;;  %v34_v6 = vld [vmem:[%s808_s1] sm:$0xff]  ;;  %v690_v16 = vand.u32 127, %v26_v14  ;;  %v552_v50 = vld [vmem:[%s809_s0 + $0x10] sm:$0xff] }
   0x3   :  { %42 = vperm.xlu0 %568, %v38_v3   ;;  %v548_v5 = vld [vmem:[%s810_s6 + $0x8] sm:$0xff]  ;;  %183 = vmatpush.msra.mxu2 %v37_v0  ;;  %v31_v7 = vld [vmem:[%s810_s6] sm:$0xff]  ;;  %v490_v19 = vld [vmem:[%s813_s4 + $0x10] sm:$0xff] }
   0x4   :  { %66 = vmatpush.msra.mxu0 %v36_v1  ;;  %83 = vrot.lane.b32.xlu1 %v548_v5, %s613_s11  ;;  %v681_v8 = vld [vmem:[%s811_s2] ss:$0 sm:$0xff]  ;;  %vm28_vm1 = vcmp.ge.s32.totalorder %v690_v16, 64  ;;  %vm29_vm2 = vcmp.lt.s32.totalorder %v690_v16, 96  ;;  %s614_s2 = smov 64   ;;  %v550_v22 = vld [vmem:[%s809_s0 + $0x8] sm:$0xff] }
   0x5   :  { %129 = vmatpush.msra.mxu1 %v36_v1  ;;  %184 = vmatpush.msra.mxu2 %v36_v1  ;;  %v687_v11 = vld [vmem:[%s812_s3] ss:$0 sm:$0xff]  ;;  %vm694_vm3 = vmand %vm28_vm1, %vm29_vm2  ;;  %v554_v5 = vld [vmem:[%s809_s0 + $0x18] sm:$0xff]  ;;  %vm521_vm5 = vcmp.eq.s32.totalorder %v690_v16, 0 }
   0x6   :  { %67 = vmatpush.msra.mxu0 %v35_v4  ;;  %238 = vmatpush.msra.mxu3 %v37_v0 }
   0x7   :  { %130 = vmatpush.msra.mxu1 %v35_v4  ;;  %185 = vmatpush.msra.mxu2 %v35_v4 }
   0x8   :  { %68 = vmatpush.msra.mxu0 %v34_v6  ;;  %239 = vmatpush.msra.mxu3 %v36_v1 }
   0x9   :  { %549 = vmatmul.msk.f32.vlgmr.msra.gmra.mxu0 %vm49_vm0, %v31_v7  ;;  %131 = vmatpush.msra.mxu1 %v34_v6 }
   0xa   :  { %186 = vmatpush.msra.mxu2 %v34_v6  ;;  %240 = vmatpush.msra.mxu3 %v35_v4 }
   0xb   :  { %570 = vset.pattern.permute.xlu1 %v612_v2  ;;  %293 = vmatpush.msrb.mxu0 %v37_v0 }
   0xc   :  { %241 = vmatpush.msra.mxu3 %v34_v6  ;;  %348 = vmatpush.msrb.mxu1 %v37_v0 }
   0xd   :  { %294 = vmatpush.msrb.mxu0 %v36_v1  ;;  %403 = vmatpush.msrb.mxu2 %v37_v0 }
   0xe   :  { %349 = vmatpush.msrb.mxu1 %v36_v1  ;;  %458 = vmatpush.msrb.mxu3 %v37_v0 }
   0xf   :  { %295 = vmatpush.msrb.mxu0 %v35_v4  ;;  %404 = vmatpush.msrb.mxu2 %v36_v1 }
  0x10   :  { %350 = vmatpush.msrb.mxu1 %v35_v4  ;;  %459 = vmatpush.msrb.mxu3 %v36_v1 }
  0x11   :  { %296 = vmatpush.msrb.mxu0 %v34_v6  ;;  %405 = vmatpush.msrb.mxu2 %v35_v4 }
  0x12   :  { %351 = vmatpush.msrb.mxu1 %v34_v6  ;;  %460 = vmatpush.msrb.mxu3 %v35_v4 }
  0x13   :  { %406 = vmatpush.msrb.mxu2 %v34_v6 }
  0x14   :  { %461 = vmatpush.msrb.mxu3 %v34_v6 }
  0x75   :  { %v43_v9 = vpop.permute.xlu0 %42 }
  0x76   :  { %v48_v10 = vmul.f32 %v681_v8, %v43_v9  ;;  %v84_v25 = vpop.permute.xlu1 %83 }
  0x86   :  { %v70_v12 = vpop.f32.mrf.mxu0 }
  0x87   :  { %v71_v13 = vadd.f32 %v70_v12, %v48_v10 }
  0x89   :  { %v77_v15 = vadd.f32 %v687_v11, %v71_v13 }
  0x8b   :  { %574 = vtanh.f32 %v77_v15 }
  0x91   :  { %v575_v17 = vpop.eup %574 }
  0x92   :  { %v79_v18 = vmul.f32 0.5, %v575_v17 }
  0x94   :  { %v80_v20 = vadd.f32 0.5, %v79_v18 }
  0x96   :  { %v81_v21 = vsel %vm694_vm3, %v575_v17, %v80_v20 }
  0x97   :  { %88 = vrot.lane.b32.xlu0 %v81_v21, %s614_s2  ;;  %v86_v26 = vmul.f32 %v84_v25, %v81_v21 }
  0x9f   :  { %107 = vperm.xlu0 %568, %v550_v22   ;;  %v556_v22 = vld [vmem:[%s809_s0 + $0x20] sm:$0xff] }
 0x109   :  { %v89_v23 = vpop.permute.xlu0 %88 }
 0x10a   :  { %v91_v24 = vmul.f32 %v89_v23, %v81_v21 }
 0x10c   :  { %93 = vrot.lane.b32.xlu1 %v91_v24, %s613_s11 }
 0x111   :  { %v108_v33 = vpop.permute.xlu0 %107 }
 0x112   :  { %v110_v34 = vmul.f32 %v681_v8, %v108_v33 }
 0x17e   :  { %v94_v27 = vpop.permute.xlu1 %93 }
 0x17f   :  { %v96_v28 = vadd.f32 %v94_v27, %v86_v26 }
 0x181   :  { %576 = vtanh.f32 %v96_v28 }
 0x187   :  { %v577_v29 = vpop.eup %576 }
 0x188   :  { %99 = vrot.lane.b32.xlu2 %v577_v29, %s614_s2 }
 0x1e2   :  { %v100_v30 = vpop.permute.xlu2 %99 }
 0x1e3   :  { %v102_v31 = vmul.f32 %v100_v30, %v81_v21 }
 0x1e5   :  { %112 = vrot.lane.b32.xlu2 %v102_v31, %s613_s11 }
 0x23f   :  { %v113_v32 = vpop.permute.xlu2 %112 }
 0x240   :  { %551 = vmatmul.msk.f32.vlgmr.msra.gmra.mxu1 %vm49_vm0, %v113_v32 }
 0x2bd   :  { %v133_v35 = vpop.f32.mrf.mxu1 }
 0x2be   :  { %v134_v36 = vadd.f32 %v133_v35, %v110_v34 }
 0x2c0   :  { %v136_v37 = vadd.f32 %v687_v11, %v134_v36 }
 0x2c2   :  { %578 = vtanh.f32 %v136_v37 }
 0x2c8   :  { %v579_v38 = vpop.eup %578 }
 0x2c9   :  { %v138_v39 = vmul.f32 0.5, %v579_v38 }
 0x2cb   :  { %v139_v40 = vadd.f32 0.5, %v138_v39 }
 0x2cd   :  { %v140_v41 = vsel %vm694_vm3, %v579_v38, %v139_v40 }
 0x2ce   :  { %143 = vrot.lane.b32.xlu1 %v140_v41, %s614_s2  ;;  %v141_v44 = vmul.f32 %v140_v41, %v96_v28 }
 0x340   :  { %v144_v42 = vpop.permute.xlu1 %143 }
 0x341   :  { %v146_v43 = vmul.f32 %v144_v42, %v140_v41 }
 0x343   :  { %148 = vrot.lane.b32.xlu2 %v146_v43, %s613_s11 }
 0x34b   :  { %162 = vperm.xlu2 %569, %v552_v50  }
 0x39d   :  { %v149_v45 = vpop.permute.xlu2 %148 }
 0x39e   :  { %v151_v46 = vadd.f32 %v149_v45, %v141_v44 }
 0x3a0   :  { %580 = vtanh.f32 %v151_v46 }
 0x3a5   :  { %v163_v52 = vpop.permute.xlu2 %162 }
 0x3a6   :  { %v581_v47 = vpop.eup %580  ;;  %v165_v53 = vmul.f32 %v681_v8, %v163_v52 }
 0x3a7   :  { %154 = vrot.lane.b32.xlu0 %v581_v47, %s614_s2 }
 0x419   :  { %v155_v48 = vpop.permute.xlu0 %154 }
 0x41a   :  { %v157_v49 = vmul.f32 %v155_v48, %v140_v41  ;;  %v558_v41 = vld [vmem:[%s809_s0 + $0x28] sm:$0xff] }
 0x41c   :  { %167 = vrot.lane.b32.xlu1 %v157_v49, %s613_s11 }
 0x48e   :  { %v168_v51 = vpop.permute.xlu1 %167 }
 0x48f   :  { %553 = vmatmul.msk.f32.vlgmr.msra.gmra.mxu2 %vm49_vm0, %v168_v51 }
 0x512   :  { %v188_v54 = vpop.f32.mrf.mxu2 }
 0x513   :  { %v189_v55 = vadd.f32 %v188_v54, %v165_v53 }
 0x515   :  { %v191_v56 = vadd.f32 %v687_v11, %v189_v55 }
 0x517   :  { %582 = vtanh.f32 %v191_v56 }
 0x51d   :  { %v583_v57 = vpop.eup %582 }
 0x51e   :  { %v193_v58 = vmul.f32 0.5, %v583_v57 }
 0x520   :  { %v194_v59 = vadd.f32 0.5, %v193_v58 }
 0x522   :  { %v195_v60 = vsel %vm694_vm3, %v583_v57, %v194_v59 }
 0x523   :  { %198 = vrot.lane.b32.xlu0 %v195_v60, %s614_s2  ;;  %v196_v63 = vmul.f32 %v195_v60, %v151_v46 }
 0x595   :  { %v199_v61 = vpop.permute.xlu0 %198 }
 0x596   :  { %v201_v62 = vmul.f32 %v199_v61, %v195_v60 }
 0x598   :  { %203 = vrot.lane.b32.xlu1 %v201_v62, %s613_s11 }
 0x5a0   :  { %217 = vperm.xlu1 %570, %v554_v5  }
 0x60a   :  { %v204_v0 = vpop.permute.xlu1 %203 }
 0x60b   :  { %v206_v1 = vadd.f32 %v204_v0, %v196_v63 }
 0x60d   :  { %584 = vtanh.f32 %v206_v1 }
 0x612   :  { %v218_v7 = vpop.permute.xlu1 %217 }
 0x613   :  { %v585_v2 = vpop.eup %584  ;;  %v220_v9 = vmul.f32 %v681_v8, %v218_v7 }
 0x614   :  { %209 = vrot.lane.b32.xlu2 %v585_v2, %s614_s2 }
 0x66e   :  { %v210_v3 = vpop.permute.xlu2 %209 }
 0x66f   :  { %v212_v4 = vmul.f32 %v210_v3, %v195_v60  ;;  %v560_v60 = vld [vmem:[%s809_s0 + $0x30] sm:$0xff] }
 0x671   :  { %222 = vrot.lane.b32.xlu0 %v212_v4, %s613_s11 }
 0x6e3   :  { %v223_v6 = vpop.permute.xlu0 %222 }
 0x6e4   :  { %555 = vmatmul.msk.f32.vlgmr.msra.gmra.mxu3 %vm49_vm0, %v223_v6 }
 0x767   :  { %v243_v10 = vpop.f32.mrf.mxu3 }
 0x768   :  { %v244_v12 = vadd.f32 %v243_v10, %v220_v9 }
 0x76a   :  { %v246_v13 = vadd.f32 %v687_v11, %v244_v12 }
 0x76c   :  { %586 = vtanh.f32 %v246_v13 }
 0x772   :  { %v587_v14 = vpop.eup %586 }
 0x773   :  { %v248_v15 = vmul.f32 0.5, %v587_v14 }
 0x775   :  { %v249_v17 = vadd.f32 0.5, %v248_v15 }
 0x777   :  { %v250_v18 = vsel %vm694_vm3, %v587_v14, %v249_v17 }
 0x778   :  { %253 = vrot.lane.b32.xlu2 %v250_v18, %s614_s2  ;;  %v251_v23 = vmul.f32 %v250_v18, %v206_v1 }
 0x7d2   :  { %v254_v20 = vpop.permute.xlu2 %253 }
 0x7d3   :  { %v256_v21 = vmul.f32 %v254_v20, %v250_v18 }
 0x7d5   :  { %258 = vrot.lane.b32.xlu0 %v256_v21, %s613_s11 }
 0x7dd   :  { %272 = vperm.xlu0 %568, %v556_v22  }
 0x847   :  { %v259_v24 = vpop.permute.xlu0 %258 }
 0x848   :  { %v261_v25 = vadd.f32 %v259_v24, %v251_v23 }
 0x84a   :  { %588 = vtanh.f32 %v261_v25 }
 0x84f   :  { %v273_v30 = vpop.permute.xlu0 %272 }
 0x850   :  { %v589_v26 = vpop.eup %588  ;;  %v275_v31 = vmul.f32 %v681_v8, %v273_v30 }
 0x851   :  { %264 = vrot.lane.b32.xlu1 %v589_v26, %s614_s2 }
 0x8c3   :  { %v265_v27 = vpop.permute.xlu1 %264 }
 0x8c4   :  { %v267_v28 = vmul.f32 %v265_v27, %v250_v18  ;;  %v562_v18 = vld [vmem:[%s809_s0 + $0x38] sm:$0xff] }
 0x8c6   :  { %277 = vrot.lane.b32.xlu2 %v267_v28, %s613_s11 }
 0x920   :  { %v278_v29 = vpop.permute.xlu2 %277 }
 0x921   :  { %557 = vmatmul.msk.f32.vlgmr.msrb.gmra.mxu0 %vm49_vm0, %v278_v29 }
 0x99e   :  { %v298_v32 = vpop.f32.mrf.mxu0 }
 0x99f   :  { %v299_v33 = vadd.f32 %v298_v32, %v275_v31 }
 0x9a1   :  { %v301_v34 = vadd.f32 %v687_v11, %v299_v33 }
 0x9a3   :  { %590 = vtanh.f32 %v301_v34 }
 0x9a9   :  { %v591_v35 = vpop.eup %590 }
 0x9aa   :  { %v303_v36 = vmul.f32 0.5, %v591_v35 }
 0x9ac   :  { %v304_v37 = vadd.f32 0.5, %v303_v36 }
 0x9ae   :  { %v305_v38 = vsel %vm694_vm3, %v591_v35, %v304_v37 }
 0x9af   :  { %308 = vrot.lane.b32.xlu1 %v305_v38, %s614_s2  ;;  %v306_v42 = vmul.f32 %v305_v38, %v261_v25 }
 0xa21   :  { %v309_v39 = vpop.permute.xlu1 %308 }
 0xa22   :  { %v311_v40 = vmul.f32 %v309_v39, %v305_v38 }
 0xa24   :  { %313 = vrot.lane.b32.xlu2 %v311_v40, %s613_s11 }
 0xa2c   :  { %327 = vperm.xlu2 %569, %v558_v41   ;;  %v489_v41 = vld [vmem:[%s813_s4 + $0x8] sm:$0xff] }
 0xa7e   :  { %v314_v43 = vpop.permute.xlu2 %313 }
 0xa7f   :  { %v316_v44 = vadd.f32 %v314_v43, %v306_v42  ;;  %v488_v42 = vld [vmem:[%s813_s4] sm:$0xff] }
 0xa81   :  { %592 = vtanh.f32 %v316_v44 }
 0xa86   :  { %v328_v49 = vpop.permute.xlu2 %327 }
 0xa87   :  { %v593_v45 = vpop.eup %592  ;;  %v330_v50 = vmul.f32 %v681_v8, %v328_v49 }
 0xa88   :  { %319 = vrot.lane.b32.xlu0 %v593_v45, %s614_s2 }
 0xafa   :  { %v320_v46 = vpop.permute.xlu0 %319 }
 0xafb   :  { %v322_v47 = vmul.f32 %v320_v46, %v305_v38  ;;  %v573_v46 = vld [vmem:[%s814_s5] ss:$0 sm:$0xff] }
 0xafd   :  { %332 = vrot.lane.b32.xlu1 %v322_v47, %s613_s11 }
 0xb6f   :  { %v333_v48 = vpop.permute.xlu1 %332 }
 0xb70   :  { %559 = vmatmul.msk.f32.vlgmr.msrb.gmra.mxu1 %vm49_vm0, %v333_v48 }
 0xbed   :  { %v353_v51 = vpop.f32.mrf.mxu1 }
 0xbee   :  { %v354_v52 = vadd.f32 %v353_v51, %v330_v50 }
 0xbf0   :  { %v356_v53 = vadd.f32 %v687_v11, %v354_v52 }
 0xbf2   :  { %594 = vtanh.f32 %v356_v53 }
 0xbf8   :  { %v595_v54 = vpop.eup %594 }
 0xbf9   :  { %v358_v55 = vmul.f32 0.5, %v595_v54 }
 0xbfb   :  { %v359_v56 = vadd.f32 0.5, %v358_v55 }
 0xbfd   :  { %v360_v57 = vsel %vm694_vm3, %v595_v54, %v359_v56 }
 0xbfe   :  { %363 = vrot.lane.b32.xlu0 %v360_v57, %s614_s2  ;;  %v361_v61 = vmul.f32 %v360_v57, %v316_v44 }
 0xc70   :  { %v364_v58 = vpop.permute.xlu0 %363 }
 0xc71   :  { %v366_v59 = vmul.f32 %v364_v58, %v360_v57 }
 0xc73   :  { %368 = vrot.lane.b32.xlu1 %v366_v59, %s613_s11 }
 0xc7b   :  { %382 = vperm.xlu1 %570, %v560_v60  }
 0xce5   :  { %v369_v62 = vpop.permute.xlu1 %368 }
 0xce6   :  { %v371_v63 = vadd.f32 %v369_v62, %v361_v61 }
 0xce8   :  { %596 = vtanh.f32 %v371_v63 }
 0xced   :  { %v383_v4 = vpop.permute.xlu1 %382 }
 0xcee   :  { %v597_v0 = vpop.eup %596  ;;  %v385_v5 = vmul.f32 %v681_v8, %v383_v4 }
 0xcef   :  { %374 = vrot.lane.b32.xlu2 %v597_v0, %s614_s2 }
 0xd49   :  { %v375_v1 = vpop.permute.xlu2 %374 }
 0xd4a   :  { %v377_v2 = vmul.f32 %v375_v1, %v360_v57 }
 0xd4c   :  { %387 = vrot.lane.b32.xlu0 %v377_v2, %s613_s11 }
 0xdbe   :  { %v388_v3 = vpop.permute.xlu0 %387 }
 0xdbf   :  { %561 = vmatmul.msk.f32.vlgmr.msrb.gmra.mxu2 %vm49_vm0, %v388_v3 }
 0xe42   :  { %v408_v6 = vpop.f32.mrf.mxu2 }
 0xe43   :  { %v409_v7 = vadd.f32 %v408_v6, %v385_v5 }
 0xe45   :  { %v411_v9 = vadd.f32 %v687_v11, %v409_v7 }
 0xe47   :  { %598 = vtanh.f32 %v411_v9 }
 0xe4d   :  { %v599_v10 = vpop.eup %598 }
 0xe4e   :  { %v413_v12 = vmul.f32 0.5, %v599_v10 }
 0xe50   :  { %v414_v13 = vadd.f32 0.5, %v413_v12 }
 0xe52   :  { %v415_v14 = vsel %vm694_vm3, %v599_v10, %v414_v13 }
 0xe53   :  { %418 = vrot.lane.b32.xlu2 %v415_v14, %s614_s2  ;;  %v416_v20 = vmul.f32 %v415_v14, %v371_v63 }
 0xead   :  { %v419_v15 = vpop.permute.xlu2 %418 }
 0xeae   :  { %v421_v17 = vmul.f32 %v419_v15, %v415_v14 }
 0xeb0   :  { %423 = vrot.lane.b32.xlu0 %v421_v17, %s613_s11 }
 0xeb8   :  { %437 = vperm.xlu0 %568, %v562_v18  }
 0xf22   :  { %v424_v21 = vpop.permute.xlu0 %423 }
 0xf23   :  { %v426_v22 = vadd.f32 %v424_v21, %v416_v20 }
 0xf25   :  { %600 = vtanh.f32 %v426_v22 }
 0xf2a   :  { %v438_v27 = vpop.permute.xlu0 %437 }
 0xf2b   :  { %v601_v23 = vpop.eup %600  ;;  %v440_v28 = vmul.f32 %v681_v8, %v438_v27 }
 0xf2c   :  { %429 = vrot.lane.b32.xlu1 %v601_v23, %s614_s2 }
 0xf9e   :  { %v430_v24 = vpop.permute.xlu1 %429 }
 0xf9f   :  { %v432_v25 = vmul.f32 %v430_v24, %v415_v14 }
 0xfa1   :  { %442 = vrot.lane.b32.xlu2 %v432_v25, %s613_s11 }
 0xffb   :  { %v443_v26 = vpop.permute.xlu2 %442 }
 0xffc   :  { %563 = vmatmul.msk.f32.vlgmr.msrb.gmra.mxu3 %vm49_vm0, %v443_v26 }
0x107f   :  { %v463_v29 = vpop.f32.mrf.mxu3 }
0x1080   :  { %v464_v30 = vadd.f32 %v463_v29, %v440_v28 }
0x1082   :  { %v466_v31 = vadd.f32 %v687_v11, %v464_v30  ;;  %v491_v11 = vld [vmem:[%s813_s4 + $0x18] sm:$0xff] }
0x1083   :  { %513 = vmatpush.msra.mxu0 %v491_v11 }
0x1084   :  { %602 = vtanh.f32 %v466_v31 }
0x1085   :  { %514 = vmatpush.msra.mxu0 %v490_v19 }
0x1087   :  { %515 = vmatpush.msra.mxu0 %v489_v41 }
0x1089   :  { %516 = vmatpush.msra.mxu0 %v488_v42 }
0x108a   :  { %v603_v32 = vpop.eup %602 }
0x108b   :  { %v468_v33 = vmul.f32 0.5, %v603_v32 }
0x108d   :  { %v469_v34 = vadd.f32 0.5, %v468_v33 }
0x108f   :  { %v470_v35 = vsel %vm694_vm3, %v603_v32, %v469_v34 }
0x1090   :  { %473 = vrot.lane.b32.xlu1 %v470_v35, %s614_s2  ;;  %v471_v38 = vmul.f32 %v470_v35, %v426_v22 }
0x1102   :  { %v474_v36 = vpop.permute.xlu1 %473 }
0x1103   :  { %v476_v37 = vmul.f32 %v474_v36, %v470_v35 }
0x1105   :  { %478 = vrot.lane.b32.xlu2 %v476_v37, %s613_s11 }
0x115f   :  { %v479_v39 = vpop.permute.xlu2 %478 }
0x1160   :  { %v481_v8 = vadd.f32 %v479_v39, %v471_v38 }
0x1162   :  { %604 = vtanh.f32 %v481_v8 }
0x1168   :  { %v605_v40 = vpop.eup %604 }
0x1169   :  { %484 = vrot.lane.b32.xlu0 %v605_v40, %s614_s2 }
0x11db   :  { %v485_v43 = vpop.permute.xlu0 %484 }
0x11dc   :  { %v487_v44 = vmul.f32 %v485_v43, %v470_v35 }
0x11de   :  { %497 = vrot.lane.b32.xlu1 %v487_v44, %s613_s11 }
0x1250   :  { %v498_v45 = vpop.permute.xlu1 %497 }
0x1251   :  { %564 = vmatmul.msk.f32.vlgmr.msra.gmra.mxu0 %vm49_vm0, %v498_v45 }
0x12ce   :  { %v518_v47 = vpop.f32.mrf.mxu0 }
0x12cf   :  { %v519_v48 = vadd.f32 %v573_v46, %v518_v47 }
0x12d1   :  { %v527_v49 = vand.u32 2147483647, %v519_v48  ;;  %v522_v55 = vmul.f32 1.442695, %v519_v48  ;;  %v524_v61 = vmax.f32 %v519_v48, 0.0  ;;  %vm525_vm6 = vcmp.ne.f32.partialorder %v519_v48, %v519_v48 }
0x12d3   :  { %v528_v50 = vsub.f32 0.0, %v527_v49 }
0x12d5   :  { %v529_v51 = vmul.f32 1.442695, %v528_v50 }
0x12d7   :  { %606 = vpow2.f32 %v529_v51 }
0x12dd   :  { %v607_v52 = vpop.eup %606 }
0x12de   :  { %v531_v53 = vadd.f32 1.0, %v607_v52  ;;  %v534_v54 = vmul.f32 -0.5, %v607_v52  ;;  %v537_v57 = vand.u32 2147483647, %v607_v52 }
0x12e0   :  { %608 = vlog2.f32 %v531_v53  ;;  %v535_v56 = vadd.f32 1.0, %v534_v54  ;;  %vm538_vm4 = vcmp.lt.f32.partialorder %v537_v57, 0.0004427343 }
0x12e1   :  { %610 = vpow2.f32 %v522_v55 }
0x12e2   :  { %v536_v60 = vmul.f32 %v607_v52, %v535_v56 }
0x12e6   :  { %v609_v58 = vpop.eup %608 }
0x12e7   :  { %v533_v59 = vmul.f32 0.6931472, %v609_v58  ;;  %v611_v0 = vpop.eup %610 }
0x12e9   :  { %v539_v62 = vsel %vm538_vm4, %v536_v60, %v533_v59 }
0x12ea   :  { %v540_v63 = vadd.f32 %v539_v62, %v524_v61 }
0x12ec   :  { %v541_v1 = vsel %vm525_vm6, %v519_v48, %v540_v63 }
0x12ed   :  { %v542_v2 = vsel %vm521_vm5, %v611_v0, %v541_v1 }
0x12ee   :  { %543 = vst [vmem:[%s815_s7] sm:$0xff] %v542_v2 }

</bundles_post_ra>
